<compile_context>
chip_gen: v7x
topology: tpu7x:2x2x1
jax: 0.10.0
libtpu: 0.0.40
codegen_flags: <defaults>
</compile_context>

<pallas_src>
import math

import jax
import jax.numpy as jnp
from jax import lax
from jax.experimental import pallas as pl
from jax.experimental.pallas import tpu as pltpu


def _discriminator_kernel(x_ref, w1_ref, b1_ref, w2_ref, b2_ref, o_ref):
    # x_ref:  (TB, D)    streaming activation tile (x's stored dtype)
    # w1_ref: (D, H)     resident first-layer weight (matches x's dtype)
    # b1_ref: (1, H), w2_ref: (1, H), b2_ref: (1, 1)    resident f32
    # o_ref:  (1, 1, TB) lane-dense output row for this tile
    x = x_ref[...]

    # Linear(input_dim, 10) + ReLU, f32 accumulation on the MXU.
    h = jnp.dot(x, w1_ref[...], preferred_element_type=jnp.float32) + b1_ref[...]
    h = jnp.maximum(h, 0.0)                                            # (TB, H) f32

    # Linear(10, 1): contract H directly into a lane-dense (1, TB) row (no (TB,1) column and no
    # sublane->lane transpose; same NT-contraction pattern as q @ k^T in flash attention).
    logits = lax.dot_general(
        w2_ref[...], h, (((1,), (1,)), ((), ())),
        preferred_element_type=jnp.float32) + b2_ref[...]              # (1, TB)

    # Exact sigmoid (exp on the EUP; the divide is noise on a memory-bound loop).
    probs = 1.0 / (1.0 + jnp.exp(-logits))

    o_ref[...] = probs.reshape(o_ref.shape).astype(o_ref.dtype)


def _round_up(n, m):
    return ((n + m - 1) // m) * m


def _pick_batch_tile(B, D, itemsize, *, target_bytes=2 << 20, max_bytes=4 << 20):
    """Rows per grid step, sized by streamed bytes (not row count)."""
    row_bytes = max(D * itemsize, 1)
    rows_cap = max(max_bytes // row_bytes, 8)            # VMEM-driven ceiling
    rows = min(max(target_bytes // row_bytes, 8), rows_cap)
    # Prefer >= 2 grid steps when the batch allows it (both TensorCores on v7x get work),
    # and never make the tile much wider than the batch itself.
    rows = min(rows, max((B + 1) // 2, 1))
    # Lane-dense output row: round the tile to a multiple of 128 (cost: <= 127 garbage rows in the
    # ragged last block, discarded by the wrapper's [:B] slice).  Fall back to the sublane granule
    # only when VMEM can't even hold 128 rows (pathologically large input_dim).
    granule = 128 if rows_cap >= 128 else 8
    return _round_up(max(rows, 1), granule)


def discriminator_forward(x, w1, b1, w2, b2):
    """sigmoid(relu(x @ W1 + b1) @ W2 + b2) with a batch-tiled Pallas kernel.

    Weights are stored (in, out), i.e. transposed relative to nn.Linear storage, so the kernel
    computes y = x @ W + b directly on the MXU.  x streams in its stored dtype; weights are cast
    to match (they are tiny).  Output dtype matches x.
    """
    lead = x.shape[:-1]
    D = x.shape[-1]
    x2 = x.reshape(-1, D)
    B = x2.shape[0]
    H = w1.shape[-1]
    dtype = x2.dtype
    itemsize = jnp.dtype(dtype).itemsize

    tb = _pick_batch_tile(B, D, itemsize)
    num_tiles = pl.cdiv(B, tb)

    w1_in = jnp.asarray(w1, dtype=dtype)                       # tiny; cast to x's dtype
    b1_in = jnp.asarray(b1, dtype=jnp.float32).reshape(1, H)
    w2_in = jnp.asarray(w2, dtype=jnp.float32).reshape(1, H)   # (H,1) column stored as a (1,H) row
    b2_in = jnp.asarray(b2, dtype=jnp.float32).reshape(1, 1)

    cost = pl.CostEstimate(
        flops=2 * B * H * (D + 1),
        transcendentals=B,
        bytes_accessed=B * D * itemsize + B * itemsize + D * H * itemsize + 4 * (2 * H + 1),
    )

    out = pl.pallas_call(
        _discriminator_kernel,
        out_shape=jax.ShapeDtypeStruct((num_tiles, 1, tb), dtype),
        grid_spec=pltpu.PrefetchScalarGridSpec(
            num_scalar_prefetch=0,
            grid=(num_tiles,),
            in_specs=[
                pl.BlockSpec((tb, D), lambda i: (i, 0)),   # x tile (the only streaming input)
                pl.BlockSpec((D, H), lambda i: (0, 0)),    # W1 (resident)
                pl.BlockSpec((1, H), lambda i: (0, 0)),    # b1
                pl.BlockSpec((1, H), lambda i: (0, 0)),    # W2 row
                pl.BlockSpec((1, 1), lambda i: (0, 0)),    # b2
            ],
            out_specs=pl.BlockSpec((1, 1, tb), lambda i: (i, 0, 0)),
        ),
        compiler_params=pltpu.CompilerParams(
            dimension_semantics=("parallel",),   # shard batch tiles across TCs (v7x megacore)
        ),
        cost_estimate=cost,
    )(x2, w1_in, b1_in, w2_in, b2_in)

    # Padded rows (ragged last tile) land beyond B and are sliced off here.
    return out.reshape(num_tiles * tb)[:B].reshape(*lead, 1)


def init_discriminator_params(key, input_dim, hidden=10):
    """Deterministic init matching nn.Linear's default U(-1/sqrt(fan_in), 1/sqrt(fan_in))."""
    k1, k2, k3, k4 = jax.random.split(key, 4)
    bound1 = 1.0 / math.sqrt(input_dim)
    bound2 = 1.0 / math.sqrt(hidden)
    w1 = jax.random.uniform(k1, (input_dim, hidden), jnp.float32, -bound1, bound1)
    b1 = jax.random.uniform(k2, (1, hidden), jnp.float32, -bound1, bound1)
    w2 = jax.random.uniform(k3, (hidden, 1), jnp.float32, -bound2, bound2)
    b2 = jax.random.uniform(k4, (1, 1), jnp.float32, -bound2, bound2)
    return w1, b1, w2, b2


if __name__ == "__main__":
    key = jax.random.PRNGKey(0)
    k_x, k_p = jax.random.split(key)

    B, D = 16, 32  # small shapes consistent with Discriminator(input_dim=32) on a batch of 16
    x = jax.random.normal(k_x, (B, D), jnp.float32)
    w1, b1, w2, b2 = init_discriminator_params(k_p, D)

    # Pure-JAX f32 reference of the same forward pass.
    ref = jax.nn.sigmoid(jnp.maximum(x @ w1 + b1, 0.0) @ w2 + b2)

    # f32-stored x streams as f32 (no wrapper cast); exact sigmoid -> tight agreement.
    out = jax.block_until_ready(discriminator_forward(x, w1, b1, w2, b2))
    assert out.shape == (B, 1)
    assert jnp.allclose(out, ref, atol=2e-3, rtol=0.0), float(jnp.max(jnp.abs(out - ref)))

    # bf16-stored x streams as bf16 (the fast path when activations already live in bf16).
    out_bf16 = jax.block_until_ready(
        discriminator_forward(x.astype(jnp.bfloat16), w1, b1, w2, b2))
    assert out_bf16.shape == (B, 1)
    assert jnp.allclose(out_bf16.astype(jnp.float32), ref, atol=3e-2, rtol=0.0)

    print("KERNEL_OK")
</pallas_src>

<mosaic_0001>
module attributes {stable_mosaic.version = 11 : i64} {
  func.func @_discriminator_kernel(%arg0: i32, %arg1: memref<128x32xf32, #tpu.memory_space<vmem>>, %arg2: memref<32x10xf32, #tpu.memory_space<vmem>>, %arg3: memref<1x10xf32, #tpu.memory_space<vmem>>, %arg4: memref<1x10xf32, #tpu.memory_space<vmem>>, %arg5: memref<1x1xf32, #tpu.memory_space<vmem>>, %arg6: memref<1x1x128xf32, #tpu.memory_space<vmem>>) attributes {dimension_semantics = [#tpu.dimension_semantics<parallel>], iteration_bounds = array<i64: 1>, scalar_prefetch = 0 : i64, scratch_operands = 0 : i64, tpu.core_type = #tpu.core_type<tc>, window_params = [{transform_indices = @transform_0, window_bounds = array<i64: 128, 32>}, {pipeline_mode = #tpu.pipeline_mode<synchronous>, transform_indices = @transform_1, window_bounds = array<i64: 32, 10>}, {pipeline_mode = #tpu.pipeline_mode<synchronous>, transform_indices = @transform_2, window_bounds = array<i64: 1, 10>}, {pipeline_mode = #tpu.pipeline_mode<synchronous>, transform_indices = @transform_3, window_bounds = array<i64: 1, 10>}, {pipeline_mode = #tpu.pipeline_mode<synchronous>, transform_indices = @transform_4, window_bounds = array<i64: 1, 1>}, {transform_indices = @transform_5, window_bounds = array<i64: 1, 1, 128>}]} {
    %c0 = arith.constant 0 : index
    %c0_0 = arith.constant 0 : index
    %0 = vector.load %arg1[%c0, %c0_0] : memref<128x32xf32, #tpu.memory_space<vmem>>, vector<128x32xf32>
    %c0_1 = arith.constant 0 : index
    %c0_2 = arith.constant 0 : index
    %1 = vector.load %arg2[%c0_1, %c0_2] : memref<32x10xf32, #tpu.memory_space<vmem>>, vector<32x10xf32>
    %cst = arith.constant dense<0.000000e+00> : vector<128x10xf32>
    %2 = tpu.matmul %0, %1, %cst {dimension_numbers = #tpu.dot_dimension_numbers<[1], [0], [0], [1], [0, 0, 1, 1], [], []>} : vector<128x32xf32>, vector<32x10xf32>, vector<128x10xf32> -> vector<128x10xf32>
    %c0_3 = arith.constant 0 : index
    %c0_4 = arith.constant 0 : index
    %3 = vector.load %arg3[%c0_3, %c0_4] : memref<1x10xf32, #tpu.memory_space<vmem>>, vector<1x10xf32>
    %4 = vector.broadcast %3 : vector<1x10xf32> to vector<128x10xf32>
    %5 = arith.addf %2, %4 : vector<128x10xf32>
    %cst_5 = arith.constant 0.000000e+00 : f32
    %6 = vector.broadcast %cst_5 : f32 to vector<128x10xf32>
    %7 = arith.maximumf %5, %6 : vector<128x10xf32>
    %c0_6 = arith.constant 0 : index
    %c0_7 = arith.constant 0 : index
    %8 = vector.load %arg4[%c0_6, %c0_7] : memref<1x10xf32, #tpu.memory_space<vmem>>, vector<1x10xf32>
    %cst_8 = arith.constant dense<0.000000e+00> : vector<1x128xf32>
    %9 = tpu.matmul %8, %7, %cst_8 {dimension_numbers = #tpu.dot_dimension_numbers<[1], [1], [0], [0], [0, 0, 1, 0], [], []>} : vector<1x10xf32>, vector<128x10xf32>, vector<1x128xf32> -> vector<1x128xf32>
    %c0_9 = arith.constant 0 : index
    %c0_10 = arith.constant 0 : index
    %10 = vector.load %arg5[%c0_9, %c0_10] : memref<1x1xf32, #tpu.memory_space<vmem>>, vector<1x1xf32>
    %11 = vector.broadcast %10 : vector<1x1xf32> to vector<1x128xf32>
    %12 = arith.addf %9, %11 : vector<1x128xf32>
    %cst_11 = arith.constant 0.000000e+00 : f32
    %13 = vector.broadcast %cst_11 : f32 to vector<1x128xf32>
    %14 = arith.subf %13, %12 : vector<1x128xf32>
    %15 = math.exp %14 : vector<1x128xf32>
    %cst_12 = arith.constant 1.000000e+00 : f32
    %16 = vector.broadcast %cst_12 : f32 to vector<1x128xf32>
    %17 = arith.addf %16, %15 : vector<1x128xf32>
    %cst_13 = arith.constant 1.000000e+00 : f32
    %18 = vector.broadcast %cst_13 : f32 to vector<1x128xf32>
    %19 = arith.divf %18, %17 : vector<1x128xf32>
    %20 = vector.shape_cast %19 : vector<1x128xf32> to vector<1x1x128xf32>
    %c0_14 = arith.constant 0 : index
    %c0_15 = arith.constant 0 : index
    %c0_16 = arith.constant 0 : index
    %21 = vector.load %arg6[%c0_14, %c0_15, %c0_16] : memref<1x1x128xf32, #tpu.memory_space<vmem>>, vector<1x1x128xf32>
    tpu.vector_store %arg6[%c0_14, %c0_15, %c0_16], %20 {strides = array<i32>} : memref<1x1x128xf32, #tpu.memory_space<vmem>>, vector<1x1x128xf32>,
    return
  }
  func.func @transform_0(%arg0: i32) -> (i32, i32) {
    %c0_i32 = arith.constant 0 : i32
    %c0_i32_0 = arith.constant 0 : i32
    return %arg0, %c0_i32 : i32, i32
  }
  func.func @transform_1(%arg0: i32) -> (i32, i32) {
    %c0_i32 = arith.constant 0 : i32
    %c0_i32_0 = arith.constant 0 : i32
    %c0_i32_1 = arith.constant 0 : i32
    return %c0_i32, %c0_i32_0 : i32, i32
  }
  func.func @transform_2(%arg0: i32) -> (i32, i32) {
    %c0_i32 = arith.constant 0 : i32
    %c0_i32_0 = arith.constant 0 : i32
    %c0_i32_1 = arith.constant 0 : i32
    return %c0_i32, %c0_i32_0 : i32, i32
  }
  func.func @transform_3(%arg0: i32) -> (i32, i32) {
    %c0_i32 = arith.constant 0 : i32
    %c0_i32_0 = arith.constant 0 : i32
    %c0_i32_1 = arith.constant 0 : i32
    return %c0_i32, %c0_i32_0 : i32, i32
  }
  func.func @transform_4(%arg0: i32) -> (i32, i32) {
    %c0_i32 = arith.constant 0 : i32
    %c0_i32_0 = arith.constant 0 : i32
    %c0_i32_1 = arith.constant 0 : i32
    return %c0_i32, %c0_i32_0 : i32, i32
  }
  func.func @transform_5(%arg0: i32) -> (i32, i32, i32) {
    %c0_i32 = arith.constant 0 : i32
    %c0_i32_0 = arith.constant 0 : i32
    %c0_i32_1 = arith.constant 0 : i32
    return %arg0, %c0_i32, %c0_i32_0 : i32, i32, i32
  }
}

</mosaic_0001>

<bundles_post_ra>
// kernel: tpu_custom_call.1
= control target key start
LH: loop header
LB: loop body
LE: loop exit
PB: predicated region body
PF: predicated region fallthrough
CT: control target
= control target key end

     0   :  { %s789_s0 = inlined_call_operand.vmem [shape: f32[16,32], index: 0, kind: input, shape index: {}]   ;;  %s790_s1 = inlined_call_operand.vmem [shape: f32[32,10], index: 1, kind: input, shape index: {}]   ;;  %s791_s2 = inlined_call_operand.vmem [shape: f32[1,10], index: 2, kind: input, shape index: {}]   ;;  %s792_s3 = inlined_call_operand.vmem [shape: f32[1,10], index: 3, kind: input, shape index: {}]   ;;  %s793_s4 = inlined_call_operand.<no memory space> [shape: f32[1,1], index: 4, kind: input, shape index: {}]   ;;  %s794_s5 = inlined_call_operand.hbm [shape: f32[1,1,128], index: 5, kind: output, shape index: {}]  }
   0x1   :  { %v10_v0 = vstv %s793_s4 }
   0x2   :  { %11 = vst [vmem:[#allocation2] sm:$0x1] %v10_v0 }
   0x3   :  { %v39_v1 = vld [vmem:[%s790_s1] sm:$0xff]  ;;  %v40_v2 = vld [vmem:[%s790_s1 + $0x8] sm:$0xff]  ;;  %v41_v3 = vld [vmem:[%s790_s1 + $0x10] sm:$0xff]  ;;  %vm50_vm0 = vcmask 261120  }
   0x4   :  { %v552_v4 = vpack.c.bf16 %v40_v2, %v39_v1  ;;  %v42_v5 = vld [vmem:[%s790_s1 + $0x18] sm:$0xff]  ;;  %v23_v6 = vld [vmem:[%s789_s0] sm:$0xff] }
   0x5   :  { %v556_v7 = vpack.c.bf16 %v42_v5, %v41_v3  ;;  %493 = vmatprep.mubr.msk.f32.mxu0 %vm50_vm0, %v23_v6 }
   0x6   :  { %553 = vmatprep.subr.bf16.mxu0 %v552_v4 }
   0x7   :  { %555 = vmatpush3.bf16.msra.mxu0 %v552_v4 }
   0x8   :  { %557 = vmatprep.subr.bf16.mxu0 %v556_v7 }
   0x9   :  { %12 = vsyncpa [#allocation4], 0  ;;  %v24_v8 = vld [vmem:[%s789_s0 + $0x8] sm:$0xff]  ;;  %v25_v9 = vld [vmem:[%s789_s0 + $0x10] sm:$0xff]  ;;  %v626_v23 = vmov 0.0|0.0   ;;  %vm627_vm1 = vmmov 0  }
   0xa   :  { %v26_v10 = vld [vmem:[%s789_s0 + $0x18] sm:$0xff]  ;;  %v27_v11 = vld [vmem:[%s789_s0 + $0x20] sm:$0xff]  ;;  %v28_v12 = vld [vmem:[%s789_s0 + $0x28] sm:$0xff]  ;;  %560 = vmatprep.subr.bf16.mxu1 %v626_v23  ;;  %v628_v24 = vmov 0.0   ;;  %v629_v26 = vmov 0   ;;  %vm271_vm2 = vcmask 80896  }
   0xb   :  { %559 = vmatpush3.bf16.msra.mxu0 %v556_v7  ;;  %v29_v13 = vld [vmem:[%s789_s0 + $0x30] sm:$0xff]  ;;  %v30_v14 = vld [vmem:[%s789_s0 + $0x38] sm:$0xff]  ;;  %v31_v15 = vld [vmem:[%s789_s0 + $0x40] sm:$0xff]  ;;  %549 = vmatprep.mubr.msk.f32.mxu1 %vm627_vm1, %v628_v24  ;;  %s630_s8 = smov [#allocation3]  }
   0xc   :  { %v32_v16 = vld [vmem:[%s789_s0 + $0x48] sm:$0xff]  ;;  %v33_v17 = vld [vmem:[%s789_s0 + $0x50] sm:$0xff]  ;;  %v34_v18 = vld [vmem:[%s789_s0 + $0x58] sm:$0xff]  ;;  %597 = vset.pattern.permute.xlu0 %v629_v26  ;;  %s406_s9 = sshll.u32 %s630_s8, 4  ;;  %s407_s9 = int_to_ptr.vmem [resolvable:$true] %s406_s9 }
   0xd   :  { %v35_v19 = vld [vmem:[%s789_s0 + $0x60] sm:$0xff]  ;;  %v36_v20 = vld [vmem:[%s789_s0 + $0x68] sm:$0xff]  ;;  %v37_v21 = vld [vmem:[%s789_s0 + $0x70] sm:$0xff]  ;;  %s606_s10 = scalar_lea.vmem %s407_s9, 32  ;;  %p607_p1 = scmp.lt.s32.totalorder %s407_s9, %s407_s9 }
   0xe   :  { %494 = vmatmul.mubr.msk.f32.vlgmr.msra.gmra.mrb[0].mxu0 %vm50_vm0, %v24_v8  ;;  %v38_v22 = vld [vmem:[%s789_s0 + $0x78] sm:$0xff]  ;;  %v261_v25 = vld [vmem:[#allocation2] sm:$0x1]  ;;  %vm746_vm3 = vmpackc.low %vm271_vm2, %vm271_vm2 }
   0xf   :  { %496 = vmatprep.mubr.msk.f32.mxu0 %vm50_vm0, %v25_v9  ;;  %264 = vperm.xlu0 %597, %v261_v25   ;;  %v414_v27 = vld [vmem:[%s791_s2] ss:$0 sm:$0xff] }
  0x12   :  { %497 = vmatmul.mubr.msk.f32.gmra.mrb[2].mxu0 %vm50_vm0, %v26_v10 }
  0x13   :  { %499 = vmatprep.mubr.msk.f32.mxu0 %vm50_vm0, %v27_v11 }
  0x16   :  { %500 = vmatmul.mubr.msk.f32.gmra.mrb[4].mxu0 %vm50_vm0, %v28_v12 }
  0x17   :  { %502 = vmatprep.mubr.msk.f32.mxu0 %vm50_vm0, %v29_v13 }
  0x1a   :  { %503 = vmatmul.mubr.msk.f32.gmra.mrb[6].mxu0 %vm50_vm0, %v30_v14 }
  0x1b   :  { %505 = vmatprep.mubr.msk.f32.mxu0 %vm50_vm0, %v31_v15 }
  0x1e   :  { %506 = vmatmul.mubr.msk.f32.gmra.mrb[8].mxu0 %vm50_vm0, %v32_v16 }
  0x1f   :  { %508 = vmatprep.mubr.msk.f32.mxu0 %vm50_vm0, %v33_v17 }
  0x22   :  { %509 = vmatmul.mubr.msk.f32.gmra.mrb[10].mxu0 %vm50_vm0, %v34_v18 }
  0x23   :  { %511 = vmatprep.mubr.msk.f32.mxu0 %vm50_vm0, %v35_v19 }
  0x26   :  { %512 = vmatmul.mubr.msk.f32.gmra.mrb[12].mxu0 %vm50_vm0, %v36_v20 }
  0x27   :  { %514 = vmatprep.mubr.msk.f32.mxu0 %vm50_vm0, %v37_v21  ;;  %v260_v21 = vld [vmem:[%s792_s3] sm:$0x1]  ;;  %s602_s3 = scalar_lea.vmem %s407_s9, 16 }
  0x28   :  { %p603_p0 = scmp.ne.s32.totalorder %s407_s9, %s602_s3  ;;  %p608_p2 = scmp.lt.s32.totalorder %s606_s10, %s602_s3 }
  0x2a   :  { %515 = vmatmul.mubr.msk.f32.gmra.mrb[14].mxu0 %vm50_vm0, %v38_v22  ;;  %v267_v22 = vlaneseq  ;;  %p609_p3 = por %p608_p2, %p607_p1 }
  0x2c   :  { %v268_v24 = vshrl.u32 %v267_v22, 7  ;;  %p610_p4 = pnand %p609_p3, %p603_p0 }
  0x2e   :  { %v269_v25 = vsub.s32 0, %v268_v24 }
  0x8e   :  { %v265_v26 = vpop.permute.xlu0 %264 }
  0xe1   :  { %v495_v28 = vpop.f32.mrb[0].mxu0 }
  0xe2   :  { %v171_v29 = vadd.f32 %v495_v28, %v414_v27  ;;  %v165_v30 = vpop.f32.mrb[1].mxu0 }
  0xe3   :  { %v166_v31 = vadd.f32 %v414_v27, %v165_v30 }
  0xe4   :  { %v245_v32 = vmax.f32 %v171_v29, 0.0 }
  0xe5   :  { %v244_v33 = vmax.f32 %v166_v31, 0.0  ;;  %v498_v34 = vpop.f32.mrb[2].mxu0 }
  0xe6   :  { %v181_v35 = vadd.f32 %v498_v34, %v414_v27  ;;  %v175_v36 = vpop.f32.mrb[3].mxu0 }
  0xe7   :  { %v561_v38 = vpack.c.bf16 %v245_v32, %v244_v33  ;;  %v176_v39 = vadd.f32 %v414_v27, %v175_v36 }
  0xe8   :  { %v247_v40 = vmax.f32 %v181_v35, 0.0 }
  0xe9   :  { %v246_v41 = vmax.f32 %v176_v39, 0.0  ;;  %563 = vmatpush3.bf16.xpose.msk.msra.mxu1 %vm746_vm3, %v561_v38  ;;  %v501_v42 = vpop.f32.mrb[4].mxu0 }
  0xea   :  { %v191_v43 = vadd.f32 %v501_v42, %v414_v27  ;;  %564 = vmatprep.subr.bf16.mxu1 %v626_v23  ;;  %v185_v44 = vpop.f32.mrb[5].mxu0 }
  0xeb   :  { %v565_v45 = vpack.c.bf16 %v247_v40, %v246_v41  ;;  %v186_v46 = vadd.f32 %v414_v27, %v185_v44 }
  0xec   :  { %v249_v47 = vmax.f32 %v191_v43, 0.0 }
  0xed   :  { %v248_v48 = vmax.f32 %v186_v46, 0.0  ;;  %v504_v49 = vpop.f32.mrb[6].mxu0 }
  0xee   :  { %v201_v50 = vadd.f32 %v504_v49, %v414_v27  ;;  %v195_v51 = vpop.f32.mrb[7].mxu0 }
  0xef   :  { %v569_v52 = vpack.c.bf16 %v249_v47, %v248_v48  ;;  %v196_v53 = vadd.f32 %v414_v27, %v195_v51 }
  0xf0   :  { %v251_v54 = vmax.f32 %v201_v50, 0.0 }
  0xf1   :  { %567 = vmatpush3.bf16.xpose.msk.msra.mxu1 %vm746_vm3, %v565_v45  ;;  %v250_v55 = vmax.f32 %v196_v53, 0.0  ;;  %v507_v56 = vpop.f32.mrb[8].mxu0 }
  0xf2   :  { %568 = vmatprep.subr.bf16.mxu1 %v626_v23  ;;  %v211_v57 = vadd.f32 %v507_v56, %v414_v27  ;;  %v205_v58 = vpop.f32.mrb[9].mxu0 }
  0xf3   :  { %v573_v59 = vpack.c.bf16 %v251_v54, %v250_v55  ;;  %v206_v60 = vadd.f32 %v414_v27, %v205_v58 }
  0xf4   :  { %v253_v61 = vmax.f32 %v211_v57, 0.0 }
  0xf5   :  { %v252_v62 = vmax.f32 %v206_v60, 0.0  ;;  %v510_v63 = vpop.f32.mrb[10].mxu0 }
  0xf6   :  { %v221_v0 = vadd.f32 %v510_v63, %v414_v27  ;;  %v215_v1 = vpop.f32.mrb[11].mxu0 }
  0xf7   :  { %v577_v2 = vpack.c.bf16 %v253_v61, %v252_v62  ;;  %v216_v3 = vadd.f32 %v414_v27, %v215_v1 }
  0xf8   :  { %v255_v4 = vmax.f32 %v221_v0, 0.0 }
  0xf9   :  { %571 = vmatpush3.bf16.xpose.msk.msra.mxu1 %vm746_vm3, %v569_v52  ;;  %v254_v5 = vmax.f32 %v216_v3, 0.0  ;;  %v513_v6 = vpop.f32.mrb[12].mxu0 }
  0xfa   :  { %572 = vmatprep.subr.bf16.mxu1 %v626_v23  ;;  %v231_v7 = vadd.f32 %v513_v6, %v414_v27  ;;  %v225_v8 = vpop.f32.mrb[13].mxu0 }
  0xfb   :  { %v581_v9 = vpack.c.bf16 %v255_v4, %v254_v5  ;;  %v226_v10 = vadd.f32 %v414_v27, %v225_v8 }
  0xfc   :  { %v257_v11 = vmax.f32 %v231_v7, 0.0 }
  0xfd   :  { %v256_v12 = vmax.f32 %v226_v10, 0.0  ;;  %v516_v13 = vpop.f32.mrb[14].mxu0 }
  0xfe   :  { %v241_v14 = vadd.f32 %v516_v13, %v414_v27  ;;  %v235_v15 = vpop.f32.mrb[15].mxu0 }
  0xff   :  { %v585_v16 = vpack.c.bf16 %v257_v11, %v256_v12  ;;  %v236_v17 = vadd.f32 %v414_v27, %v235_v15  ;;  %v270_v27 = vrot.slane %v265_v26, %v269_v25 }
 0x100   :  { %v259_v18 = vmax.f32 %v241_v14, 0.0 }
 0x101   :  { %575 = vmatpush3.bf16.xpose.msk.msra.mxu1 %vm746_vm3, %v573_v59  ;;  %v258_v19 = vmax.f32 %v236_v17, 0.0 }
 0x102   :  { %576 = vmatprep.subr.bf16.mxu1 %v626_v23 }
 0x103   :  { %v589_v20 = vpack.c.bf16 %v259_v18, %v258_v19 }
 0x109   :  { %579 = vmatpush3.bf16.xpose.msk.msra.mxu1 %vm746_vm3, %v577_v2 }
 0x10a   :  { %580 = vmatprep.subr.bf16.mxu1 %v626_v23 }
 0x111   :  { %583 = vmatpush3.bf16.xpose.msk.msra.mxu1 %vm746_vm3, %v581_v9 }
 0x112   :  { %584 = vmatprep.subr.bf16.mxu1 %v626_v23 }
 0x119   :  { %587 = vmatpush3.bf16.xpose.msk.msra.mxu1 %vm746_vm3, %v585_v16 }
 0x11a   :  { %588 = vmatprep.subr.bf16.mxu1 %v626_v23 }
 0x121   :  { %591 = vmatpush3.bf16.xpose.msk.msra.mxu1 %vm746_vm3, %v589_v20 }
 0x128   :  { %550 = vmatmul.mubr.msk.f32.vlgmr.msra.gmra.mrb[0].mxu1 %vm271_vm2, %v260_v21 }
 0x1fb   :  { %v389_v28 = vpop.f32.mrb[0].mxu1 }
 0x1fc   :  { %v390_v29 = vadd.f32 %v389_v28, %v270_v27  ;;  %v551_v30 = vpop.f32.mrb[1].mxu1 }
 0x1fe   :  { %v393_v31 = vsub.f32 0.0, %v390_v29 }
 0x200   :  { %v394_v32 = vmul.f32 1.442695, %v393_v31 }
 0x202   :  { %598 = vpow2.f32 %v394_v32 }
 0x20c   :  { %v599_v23 = vpop.eup %598 }
 0x20d   :  { %v396_v33 = vadd.f32 1.0, %v599_v23 }
 0x20f   :  { %600 = vrcp.f32 %v396_v33 }
 0x219   :  { %v601_v34 = vpop.eup %600 }
 0x21a   :  { %399 = vst [vmem:[#allocation3] sm:$0x1] %v601_v34 }
 0x21b   :  { %613 = shalt.err (!%p610_p4)
}
 0x21c   :  { %s614_s13 = scalar_lea.hbm %s794_s5, 16 }
 0x21d   :  { %p615_p5 = scmp.ne.s32.totalorder %s794_s5, %s614_s13  ;;  %p618_p6 = scmp.lt.u32.totalorder %s614_s13, %s794_s5 }
 0x21f   :  { %p620_p7 = pnand %p618_p6, %p615_p5 }
 0x221   :  { %623 = shalt.err (!%p620_p7)
}
 0x222   :  { %409 = dma.vmem_to_hbm [thread:$0]  %s407_s9, 16, %s794_s5, [#allocation4]  }
 0x223   :  { %624 = dma.done.wait [#allocation4], 16  }
 0x224   :  { %625 = vsyncadd [#allocation4], 4294967280 }
 0x225   :  { %413 = vsyncpa [#allocation4], 1 }

</bundles_post_ra>
